<compile_context>
chip_gen: v5e
topology: v5e:2x2
jax: 0.10.0
libtpu: 0.0.40
codegen_flags: <defaults>
</compile_context>

<pallas_src>
import functools
import math

import jax
import jax.numpy as jnp
from jax.experimental import pallas as pl
from jax.experimental.pallas import tpu as pltpu

_LANES = 128
_TWO_PI = 2.0 * math.pi
_DEG2RAD = math.pi / 180.0


def _wrap(d, period):
    """Wrap d to (-period/2, period/2] (up to sign at the exact boundary)."""
    return d - period * jnp.round(d * (1.0 / period))


def _angular_loss_kernel(pred_ref, target_ref, out_ref, *,
                         period, block_rows, steps_per_split, n_valid_rows):
    """Accumulate sum(wrap(pred - target)^2) into a resident (8,128) output."""
    j = pl.program_id(1)

    @pl.when(j == 0)
    def _():
        out_ref[...] = jnp.zeros_like(out_ref)

    # Cast to f32 on the tile (inputs stay in their HBM dtype), VPU-only math.
    d = pred_ref[...].astype(jnp.float32) - target_ref[...].astype(jnp.float32)
    wrapped = d - period * jnp.round(d * (1.0 / period))
    sq = wrapped * wrapped

    if n_valid_rows is not None:
        # Row-partial (or clamped/out-of-range) block: zero the invalid rows.
        c = pl.program_id(0)
        row0 = (c * steps_per_split + j) * block_rows
        rows = row0 + jax.lax.broadcasted_iota(jnp.int32, sq.shape, 0)
        sq = jnp.where(rows < n_valid_rows, sq, 0.0)

    # Vreg-shaped accumulation: pure VPU adds, no per-step cross-lane reduce.
    out_ref[...] += jnp.sum(sq.reshape(block_rows // 8, 8, _LANES), axis=0)


def angular_loss(pred, target, is_degrees=False, *,
                 block_rows=4096, parallel_splits=1, min_kernel_elems=65536):
    """Pallas TPU implementation of AngularLoss.forward. Returns f32 scalar."""
    assert pred.shape == target.shape
    n_true = int(pred.size)
    if n_true == 0:
        return jnp.float32(jnp.nan)   # mean over empty tensor

    period = 360.0 if is_degrees else _TWO_PI
    out_scale = (100.0 * _DEG2RAD * _DEG2RAD / n_true) if is_degrees \
        else (100.0 / n_true)

    p = pred.reshape(-1)
    t = target.reshape(-1)

    bulk_rows = n_true // _LANES
    tail = n_true % _LANES

    # Small-input fast path: one fused XLA elementwise+reduce beats the fixed
    # pallas_call launch + wrapper ops at typical (batch, 2) sizes.
    if bulk_rows == 0 or n_true < min_kernel_elems:
        d = p.astype(jnp.float32) - t.astype(jnp.float32)
        w = _wrap(d, period)
        return (jnp.sum(w * w) * out_scale).astype(jnp.float32)

    # In-kernel cast: keep HBM traffic in the native dtype where possible.
    if p.dtype == jnp.float32:
        sub_align = 8
    elif p.dtype in (jnp.bfloat16, jnp.float16):
        sub_align = 16
    else:
        p = p.astype(jnp.float32)
        t = t.astype(jnp.float32)
        sub_align = 8

    bulk = bulk_rows * _LANES
    if tail:
        p_bulk, t_bulk = p[:bulk], t[:bulk]
    else:
        p_bulk, t_bulk = p, t                      # reshape of contiguous: free
    p2 = p_bulk.reshape(bulk_rows, _LANES)
    t2 = t_bulk.reshape(bulk_rows, _LANES)

    # Block sizing: big tiles amortize the ~0.35us/step overhead; the
    # double-buffered footprint (2 inputs x 2 bufs x tile) must fit scoped VMEM.
    br = max(sub_align, min(int(block_rows), bulk_rows))
    br = -(-br // sub_align) * sub_align           # sublane-aligned tile
    steps_total = -(-bulk_rows // br)

    splits = max(1, min(int(parallel_splits), steps_total))
    steps_per_split = -(-steps_total // splits)
    splits = -(-steps_total // steps_per_split)    # every split has real work
    covered_rows = splits * steps_per_split * br
    need_mask = covered_rows != bulk_rows

    last_block = steps_total - 1

    def in_map(c, j):
        # Clamp so no block request starts past the array (masked anyway).
        return (jnp.minimum(c * steps_per_split + j, last_block), 0)

    kernel = functools.partial(
        _angular_loss_kernel,
        period=period,
        block_rows=br,
        steps_per_split=steps_per_split,
        n_valid_rows=bulk_rows if need_mask else None)

    partials = pl.pallas_call(
        kernel,
        out_shape=jax.ShapeDtypeStruct((splits, 8, _LANES), jnp.float32),
        grid_spec=pltpu.PrefetchScalarGridSpec(
            num_scalar_prefetch=0,
            grid=(splits, steps_per_split),
            in_specs=[
                pl.BlockSpec((br, _LANES), in_map),
                pl.BlockSpec((br, _LANES), in_map),
            ],
            out_specs=pl.BlockSpec((None, 8, _LANES), lambda c, j: (c, 0, 0)),
        ),
        compiler_params=pltpu.CompilerParams(
            dimension_semantics=("parallel", "arbitrary"),
        ),
    )(p2, t2)

    total = jnp.sum(partials)
    if tail:
        dt = p[bulk:].astype(jnp.float32) - t[bulk:].astype(jnp.float32)
        wt = _wrap(dt, period)
        total = total + jnp.sum(wt * wt)
    return (total * out_scale).astype(jnp.float32)


def angular_loss_ref(pred, target, is_degrees=False):
    """Pure-JAX mirror of the PyTorch forward, for verification."""
    pred = pred.astype(jnp.float32)
    target = target.astype(jnp.float32)
    if is_degrees:
        pred = pred * (jnp.pi / 180.0)
        target = target * (jnp.pi / 180.0)
    d = pred - target
    wrapped = jnp.arctan2(jnp.sin(d), jnp.cos(d)) * 10.0
    return jnp.mean(wrapped ** 2)


if __name__ == "__main__":
    key = jax.random.PRNGKey(0)
    k1, k2, k3, k4 = jax.random.split(key, 4)

    def rand(k, n):
        return jax.random.uniform(k, (n, 2), jnp.float32,
                                  minval=-2.0 * jnp.pi, maxval=2.0 * jnp.pi)

    # 1) Typical small (batch, 2) -> fast path (fused XLA, no kernel launch).
    p_s, t_s = rand(k1, 8), rand(k2, 8)
    got = jax.block_until_ready(angular_loss(p_s, t_s))
    ref = angular_loss_ref(p_s, t_s)
    assert jnp.allclose(got, ref, rtol=1e-4, atol=1e-4), (got, ref)

    # 2) Pallas kernel path, radians (512*2 = 1024 elems = 8 full lane rows).
    p_k, t_k = rand(k3, 512), rand(k4, 512)
    got = jax.block_until_ready(angular_loss(p_k, t_k, min_kernel_elems=0))
    ref = angular_loss_ref(p_k, t_k)
    assert jnp.allclose(got, ref, rtol=1e-4, atol=1e-4), (got, ref)

    # 3) Pallas kernel path, degrees (period-360 wrap, folded scale).
    p_deg = p_k * (180.0 / jnp.pi)
    t_deg = t_k * (180.0 / jnp.pi)
    got = jax.block_until_ready(
        angular_loss(p_deg, t_deg, is_degrees=True, min_kernel_elems=0))
    ref = angular_loss_ref(p_deg, t_deg, is_degrees=True)
    assert jnp.allclose(got, ref, rtol=1e-4, atol=1e-4), (got, ref)

    # 4) Multi-block grid + 2-way parallel split + lane tail + masked partial
    #    last block (tiny block_rows on purpose to exercise every branch).
    p_m = jax.random.uniform(k1, (1234, 2), jnp.float32, minval=-7.0, maxval=7.0)
    t_m = jax.random.uniform(k2, (1234, 2), jnp.float32, minval=-7.0, maxval=7.0)
    got = jax.block_until_ready(
        angular_loss(p_m, t_m, block_rows=8, parallel_splits=2,
                     min_kernel_elems=0))
    ref = angular_loss_ref(p_m, t_m)
    assert jnp.allclose(got, ref, rtol=1e-4, atol=1e-4), (got, ref)

    print("KERNEL_OK")
</pallas_src>

<mosaic_0001>
module attributes {stable_mosaic.version = 11 : i64} {
  func.func @_angular_loss_kernel(%arg0: i32, %arg1: i32, %arg2: memref<8x128xf32, #tpu.memory_space<vmem>>, %arg3: memref<8x128xf32, #tpu.memory_space<vmem>>, %arg4: memref<1x8x128xf32, #tpu.memory_space<vmem>>) attributes {dimension_semantics = [#tpu.dimension_semantics<parallel>, #tpu.dimension_semantics<arbitrary>], iteration_bounds = array<i64: 1, 1>, scalar_prefetch = 0 : i64, scratch_operands = 0 : i64, tpu.core_type = #tpu.core_type<tc>, window_params = [{transform_indices = @transform_0, window_bounds = array<i64: 8, 128>}, {transform_indices = @transform_1, window_bounds = array<i64: 8, 128>}, {transform_indices = @transform_2, window_bounds = array<i64: 1, 8, 128>}]} {
    %c0_i32 = arith.constant 0 : i32
    %0 = arith.cmpi eq, %arg1, %c0_i32 : i32
    %1 = arith.extui %0 : i1 to i32
    %c0_i32_0 = arith.constant 0 : i32
    %2 = arith.cmpi ne, %1, %c0_i32_0 : i32
    scf.if %2 {
      %cst_12 = arith.constant 0.000000e+00 : f32
      %21 = vector.broadcast %cst_12 : f32 to vector<8x128xf32>
      %c0_13 = arith.constant 0 : index
      %c0_14 = arith.constant 0 : index
      %c0_15 = arith.constant 0 : index
      %22 = vector.load %arg4[%c0_13, %c0_14, %c0_15] : memref<1x8x128xf32, #tpu.memory_space<vmem>>, vector<1x8x128xf32>
      %23 = vector.shape_cast %22 : vector<1x8x128xf32> to vector<8x128xf32>
      %24 = vector.shape_cast %21 : vector<8x128xf32> to vector<1x8x128xf32>
      tpu.vector_store %arg4[%c0_13, %c0_14, %c0_15], %24 {strides = array<i32>} : memref<1x8x128xf32, #tpu.memory_space<vmem>>, vector<1x8x128xf32>,
    } else {
    }
    %c0 = arith.constant 0 : index
    %c0_1 = arith.constant 0 : index
    %3 = vector.load %arg2[%c0, %c0_1] : memref<8x128xf32, #tpu.memory_space<vmem>>, vector<8x128xf32>
    %c0_2 = arith.constant 0 : index
    %c0_3 = arith.constant 0 : index
    %4 = vector.load %arg3[%c0_2, %c0_3] : memref<8x128xf32, #tpu.memory_space<vmem>>, vector<8x128xf32>
    %5 = arith.subf %3, %4 : vector<8x128xf32>
    %cst = arith.constant 0.159154937 : f32
    %6 = vector.broadcast %cst : f32 to vector<8x128xf32>
    %7 = arith.mulf %5, %6 : vector<8x128xf32>
    %8 = math.roundeven %7 : vector<8x128xf32>
    %cst_4 = arith.constant 6.28318548 : f32
    %9 = vector.broadcast %cst_4 : f32 to vector<8x128xf32>
    %10 = arith.mulf %9, %8 : vector<8x128xf32>
    %11 = arith.subf %5, %10 : vector<8x128xf32>
    %12 = arith.mulf %11, %11 : vector<8x128xf32>
    %c0_5 = arith.constant 0 : index
    %c0_6 = arith.constant 0 : index
    %c0_7 = arith.constant 0 : index
    %13 = vector.load %arg4[%c0_5, %c0_6, %c0_7] : memref<1x8x128xf32, #tpu.memory_space<vmem>>, vector<1x8x128xf32>
    %14 = vector.shape_cast %13 : vector<1x8x128xf32> to vector<8x128xf32>
    %15 = vector.shape_cast %12 : vector<8x128xf32> to vector<1x8x128xf32>
    %cst_8 = arith.constant dense<0.000000e+00> : vector<8x128xf32>
    %16 = vector.multi_reduction <add>, %15, %cst_8 [0] : vector<1x8x128xf32> to vector<8x128xf32>
    %17 = arith.addf %14, %16 : vector<8x128xf32>
    %c0_9 = arith.constant 0 : index
    %c0_10 = arith.constant 0 : index
    %c0_11 = arith.constant 0 : index
    %18 = vector.load %arg4[%c0_9, %c0_10, %c0_11] : memref<1x8x128xf32, #tpu.memory_space<vmem>>, vector<1x8x128xf32>
    %19 = vector.shape_cast %18 : vector<1x8x128xf32> to vector<8x128xf32>
    %20 = vector.shape_cast %17 : vector<8x128xf32> to vector<1x8x128xf32>
    tpu.vector_store %arg4[%c0_9, %c0_10, %c0_11], %20 {strides = array<i32>} : memref<1x8x128xf32, #tpu.memory_space<vmem>>, vector<1x8x128xf32>,
    return
  }
  func.func @transform_0(%arg0: i32, %arg1: i32) -> (i32, i32) {
    %c1_i32 = arith.constant 1 : i32
    %0 = arith.muli %arg0, %c1_i32 : i32
    %1 = arith.addi %0, %arg1 : i32
    %c0_i32 = arith.constant 0 : i32
    %2 = arith.minsi %1, %c0_i32 : i32
    %c0_i32_0 = arith.constant 0 : i32
    %c0_i32_1 = arith.constant 0 : i32
    return %2, %c0_i32_0 : i32, i32
  }
  func.func @transform_1(%arg0: i32, %arg1: i32) -> (i32, i32) {
    %c1_i32 = arith.constant 1 : i32
    %0 = arith.muli %arg0, %c1_i32 : i32
    %1 = arith.addi %0, %arg1 : i32
    %c0_i32 = arith.constant 0 : i32
    %2 = arith.minsi %1, %c0_i32 : i32
    %c0_i32_0 = arith.constant 0 : i32
    %c0_i32_1 = arith.constant 0 : i32
    return %2, %c0_i32_0 : i32, i32
  }
  func.func @transform_2(%arg0: i32, %arg1: i32) -> (i32, i32, i32) {
    %c0_i32 = arith.constant 0 : i32
    %c0_i32_0 = arith.constant 0 : i32
    %c0_i32_1 = arith.constant 0 : i32
    return %arg0, %c0_i32, %c0_i32_0 : i32, i32, i32
  }
}

</mosaic_0001>

<bundles_post_ra>
// kernel: tpu_custom_call.1
= control target key start
LH: loop header
LB: loop body
LE: loop exit
PB: predicated region body
PF: predicated region fallthrough
CT: control target
= control target key end

     0   :  { %7 = vsyncpa [#allocation3], 0  ;;  %s212_s0 = inlined_call_operand.hbm [shape: f32[8,128], index: 0, kind: input, shape index: {}]   ;;  %s213_s1 = inlined_call_operand.hbm [shape: f32[8,128], index: 1, kind: input, shape index: {}]   ;;  %s214_s2 = inlined_call_operand.hbm [shape: f32[1,8,128], index: 2, kind: output, shape index: {}]  }
   0x1   :  { %8 = vsyncpa [#allocation6], 0 }
   0x2   :  { %9 = vsyncpa [#allocation4], 0  ;;  %s20_s11 = sshll.u32 %s212_s0, 4  ;;  %s185_s12 = smov [#allocation2]   ;;  %s21_s11 = int_to_ptr.hbm [resolvable:$true] %s20_s11 }
   0x3   :  { %s22_s13 = sshll.u32 %s185_s12, 4  ;;  %s36_s16 = sshll.u32 %s213_s1, 4  ;;  %s23_s13 = int_to_ptr.vmem [resolvable:$true] %s22_s13  ;;  %s37_s16 = int_to_ptr.hbm [resolvable:$true] %s36_s16 }
   0x4   :  { %25 = dma.hbm_to_vmem [thread:$0]  %s21_s11, 128, %s23_s13, [#allocation3]  }
   0x5   :  { %s186_s17 = smov [#allocation5]  }
   0x6   :  { %s38_s18 = sshll.u32 %s186_s17, 4  ;;  %s39_s18 = int_to_ptr.vmem [resolvable:$true] %s38_s18 }
   0x7   :  { %41 = dma.hbm_to_vmem [thread:$0]  %s37_s16, 128, %s39_s18, [#allocation6]  }
   0x8   :  { %179 = dma.done.wait [#allocation3], 128  }
   0x9   :  { %180 = vsyncadd [#allocation3], 4294967168 }
   0xa   :  { %181 = dma.done.wait [#allocation6], 128  }
   0xb   :  { %182 = vsyncadd [#allocation6], 4294967168  ;;  %v61_v0 = vld [vmem:[#allocation2] sm:$0xff]  ;;  %v62_v1 = vld [vmem:[#allocation5] sm:$0xff]  ;;  %s187_s0 = smov [#allocation7]   ;;  %s80_s21 = sshll.u32 %s214_s2, 4  ;;  %s81_s21 = int_to_ptr.hbm [resolvable:$true] %s80_s21 }
   0xc   :  { %v63_v2 = vsub.f32 %v61_v0, %v62_v1  ;;  %s78_s1 = sshll.u32 %s187_s0, 4  ;;  %s79_s1 = int_to_ptr.vmem [resolvable:$true] %s78_s1 }
   0xe   :  { %v64_v3 = vmul.f32 0.15915494, %v63_v2 }
  0x10   :  { %v97_v4 = vcvt.f32.s32 %v64_v3  ;;  %v95_v5 = vand.u32 2147483647, %v64_v3  ;;  %v100_v7 = vand.u32 2147483648, %v64_v3 }
  0x12   :  { %v98_v6 = vcvt.s32.f32 %v97_v4  ;;  %vm96_vm0 = vcmp.lt.f32.partialorder %v95_v5, 8388608.0 }
  0x14   :  { %v99_v8 = vand.u32 2147483647, %v98_v6 }
  0x16   :  { %v101_v9 = vor.u32 %v100_v7, %v99_v8 }
  0x18   :  { %v102_v10 = vsel %vm96_vm0, %v101_v9, %v64_v3 }
  0x19   :  { %v66_v11 = vmul.f32 6.2831855, %v102_v10 }
  0x1b   :  { %v67_v12 = vsub.f32 %v63_v2, %v66_v11 }
  0x1d   :  { %v68_v13 = vmul.f32 %v67_v12, %v67_v12 }
  0x1f   :  { %72 = vst [vmem:[#allocation7] sm:$0xff] %v68_v13 }
  0x20   :  { %83 = dma.vmem_to_hbm [thread:$0]  %s79_s1, 128, %s81_s21, [#allocation4]  }
  0x21   :  { %183 = dma.done.wait [#allocation4], 128  }
  0x22   :  { %184 = vsyncadd [#allocation4], 4294967168 }
  0x23   :  { %88 = vsyncpa [#allocation3], 1 }
  0x24   :  { %89 = vsyncpa [#allocation6], 1 }
  0x25   :  { %90 = vsyncpa [#allocation4], 1 }

</bundles_post_ra>
